<compile_context>
chip_gen: v7x
topology: tpu7x:2x2x1
jax: 0.10.0
libtpu: 0.0.40
codegen_flags: <defaults>
</compile_context>

<pallas_src>
import functools
import math

import jax
import jax.numpy as jnp
from jax import lax
from jax.experimental import pallas as pl
from jax.experimental.pallas import tpu as pltpu

EPS = 1e-5  # nn.LayerNorm default


# ---------------------------------------------------------------------------
# Kernel 1 (lane-dense packed path): input viewed as (R, 128); each 128-lane row
# holds G = 128 // D consecutive feature groups of size D. Per-group LayerNorm
# statistics are computed with a block-diagonal pooling matmul on the MXU, which
# also broadcasts the group sums back to every lane of the group. rsqrt -> EUP.
# ---------------------------------------------------------------------------
def _layernorm_packed_kernel(x_ref, gb_ref, pool_ref, o_ref, *, d):
    x = x_ref[...].astype(jnp.float32)                         # (TR, 128)
    pool = pool_ref[...]                                       # (128, 128) f32, constant

    inv_d = 1.0 / d
    mean = jnp.dot(x, pool, preferred_element_type=jnp.float32) * inv_d
    xc = x - mean
    var = jnp.dot(xc * xc, pool, preferred_element_type=jnp.float32) * inv_d
    inv_std = lax.rsqrt(var + EPS)                             # EUP

    gamma = gb_ref[0:1, :]                                     # (1, 128), pre-tiled
    beta = gb_ref[1:2, :]                                      # (1, 128), pre-tiled
    o_ref[...] = (xc * inv_std * gamma + beta).astype(o_ref.dtype)


# ---------------------------------------------------------------------------
# Kernel 2 (generic fallback, also row-tiled): plain row-wise LayerNorm on an
# (TR, D) block, reduction along lanes. Lane-dense whenever D % 128 == 0.
# ---------------------------------------------------------------------------
def _layernorm_rows_kernel(x_ref, gb_ref, o_ref):
    x = x_ref[...].astype(jnp.float32)                         # (TR, D)
    mean = jnp.mean(x, axis=-1, keepdims=True)
    xc = x - mean
    var = jnp.mean(xc * xc, axis=-1, keepdims=True)
    y = xc * lax.rsqrt(var + EPS) * gb_ref[0:1, :] + gb_ref[1:2, :]
    o_ref[...] = y.astype(o_ref.dtype)


# ---------------------------------------------------------------------------
# Wrapper: NormalizationLayer.forward(X) == LayerNorm over the last dim.
# Only free (contiguous) reshapes; I/O stays in the input dtype.
# ---------------------------------------------------------------------------
def normalization_layer(x, gamma, beta):
    orig_shape = x.shape
    orig_dtype = x.dtype
    d = orig_shape[-1]
    n = math.prod(orig_shape[:-1]) if len(orig_shape) > 1 else 1
    gamma = gamma.astype(jnp.float32)
    beta = beta.astype(jnp.float32)
    elem_bytes = jnp.dtype(orig_dtype).itemsize

    if (n * d) % 128 == 0 and 128 % d == 0:
        # ---- lane-dense packed path ----
        g = 128 // d
        r = (n * d) // 128
        xp = x.reshape(r, 128)                                  # free reshape, native dtype
        gb = jnp.stack([jnp.tile(gamma, g), jnp.tile(beta, g)])  # (2, 128) f32

        # Block-diagonal pooling matrix, built ONCE outside the grid loop.
        ri = jnp.arange(128)[:, None] // d
        ci = jnp.arange(128)[None, :] // d
        pool = (ri == ci).astype(jnp.float32)                   # (128, 128)

        max_block_rows = 1024                                   # 512 KiB f32 / 256 KiB bf16 per buffer
        if r <= max_block_rows:
            block_rows, r_pad = r, r
        else:
            block_rows = max_block_rows
            r_pad = pl.cdiv(r, block_rows) * block_rows
            if r_pad != r:
                xp = jnp.pad(xp, ((0, r_pad - r), (0, 0)))
        nblocks = r_pad // block_rows

        cost = pl.CostEstimate(
            flops=2 * 2 * r_pad * 128 * 128 + 8 * r_pad * 128,
            transcendentals=0,
            bytes_accessed=2 * r_pad * 128 * elem_bytes + (2 + 128) * 128 * 4,
        )

        out = pl.pallas_call(
            functools.partial(_layernorm_packed_kernel, d=d),
            grid=(nblocks,),
            in_specs=[pl.BlockSpec((block_rows, 128), lambda i: (i, 0)),
                      pl.BlockSpec((2, 128), lambda i: (0, 0)),
                      pl.BlockSpec((128, 128), lambda i: (0, 0))],
            out_specs=pl.BlockSpec((block_rows, 128), lambda i: (i, 0)),
            out_shape=jax.ShapeDtypeStruct((r_pad, 128), orig_dtype),
            compiler_params=pltpu.CompilerParams(dimension_semantics=("parallel",)),
            cost_estimate=cost,
        )(xp, gb, pool)
        if r_pad != r:
            out = out[:r]
        return out.reshape(orig_shape)

    # ---- generic fallback (e.g. d a multiple of 128, or d not dividing 128) ----
    x2 = x.reshape(n, d)
    gb = jnp.stack([gamma, beta])                               # (2, d) f32

    max_block_rows = 256
    if n <= max_block_rows:
        block_rows, n_pad = n, n
    else:
        block_rows = max_block_rows
        n_pad = pl.cdiv(n, block_rows) * block_rows
        if n_pad != n:
            x2 = jnp.pad(x2, ((0, n_pad - n), (0, 0)))
    nblocks = n_pad // block_rows

    cost = pl.CostEstimate(
        flops=8 * n_pad * d,
        transcendentals=0,
        bytes_accessed=2 * n_pad * d * elem_bytes + 2 * d * 4,
    )

    out = pl.pallas_call(
        _layernorm_rows_kernel,
        grid=(nblocks,),
        in_specs=[pl.BlockSpec((block_rows, d), lambda i: (i, 0)),
                  pl.BlockSpec((2, d), lambda i: (0, 0))],
        out_specs=pl.BlockSpec((block_rows, d), lambda i: (i, 0)),
        out_shape=jax.ShapeDtypeStruct((n_pad, d), orig_dtype),
        compiler_params=pltpu.CompilerParams(dimension_semantics=("parallel",)),
        cost_estimate=cost,
    )(x2, gb)
    if n_pad != n:
        out = out[:n]
    return out.reshape(orig_shape)


def _layernorm_ref(x, gamma, beta):
    x = x.astype(jnp.float32)
    mean = jnp.mean(x, axis=-1, keepdims=True)
    xc = x - mean
    var = jnp.mean(xc * xc, axis=-1, keepdims=True)
    return xc * lax.rsqrt(var + EPS) * gamma + beta


if __name__ == "__main__":
    key = jax.random.PRNGKey(0)
    kx, kg, kb, kx2 = jax.random.split(key, 4)

    # batch=2, seq=8, hidden=32  (size == dim_embeddings == 32) -> packed lane-dense path
    B, S, D = 2, 8, 32
    x = jax.random.normal(kx, (B, S, D), dtype=jnp.float32)
    gamma = (1.0 + 0.05 * jax.random.normal(kg, (D,))).astype(jnp.float32)
    beta = (0.05 * jax.random.normal(kb, (D,))).astype(jnp.float32)

    out = jax.block_until_ready(normalization_layer(x, gamma, beta))
    ref = _layernorm_ref(x, gamma, beta)
    assert out.shape == x.shape and out.dtype == x.dtype
    assert bool(jnp.all(jnp.isfinite(out)))
    assert bool(jnp.allclose(out, ref, atol=1e-4, rtol=1e-4)), \
        float(jnp.max(jnp.abs(out - ref)))

    # Native bf16 I/O (no wrapper upcast; output stays bf16).
    x_bf = x.astype(jnp.bfloat16)
    out_bf = jax.block_until_ready(normalization_layer(x_bf, gamma, beta))
    assert out_bf.dtype == jnp.bfloat16
    assert bool(jnp.allclose(out_bf.astype(jnp.float32), ref, atol=5e-2, rtol=5e-2))

    # Generic fallback path (d multiple of 128 -> lane-dense row-tiled kernel).
    D2 = 256
    x2 = jax.random.normal(kx2, (B, S, D2), dtype=jnp.float32)
    g2 = jnp.ones((D2,), jnp.float32)
    b2 = jnp.zeros((D2,), jnp.float32)
    out2 = jax.block_until_ready(normalization_layer(x2, g2, b2))
    ref2 = _layernorm_ref(x2, g2, b2)
    assert bool(jnp.allclose(out2, ref2, atol=1e-4, rtol=1e-4))

    # TODO(synk): the DyT branch of NormalizationLayer is not implemented (class DyT is
    # not defined in the spec; the default Config selects LAYER_NORM, implemented above).
    print("KERNEL_OK")
</pallas_src>

<mosaic_0001>
module attributes {stable_mosaic.version = 11 : i64} {
  func.func @_layernorm_packed_kernel(%arg0: i32, %arg1: memref<4x128xf32, #tpu.memory_space<vmem>>, %arg2: memref<2x128xf32, #tpu.memory_space<vmem>>, %arg3: memref<128x128xf32, #tpu.memory_space<vmem>>, %arg4: memref<4x128xf32, #tpu.memory_space<vmem>>) attributes {dimension_semantics = [#tpu.dimension_semantics<parallel>], iteration_bounds = array<i64: 1>, scalar_prefetch = 0 : i64, scratch_operands = 0 : i64, tpu.core_type = #tpu.core_type<tc>, window_params = [{transform_indices = @transform_0, window_bounds = array<i64: 4, 128>}, {pipeline_mode = #tpu.pipeline_mode<synchronous>, transform_indices = @transform_1, window_bounds = array<i64: 2, 128>}, {pipeline_mode = #tpu.pipeline_mode<synchronous>, transform_indices = @transform_2, window_bounds = array<i64: 128, 128>}, {transform_indices = @transform_3, window_bounds = array<i64: 4, 128>}]} {
    %c0 = arith.constant 0 : index
    %c0_0 = arith.constant 0 : index
    %0 = vector.load %arg1[%c0, %c0_0] : memref<4x128xf32, #tpu.memory_space<vmem>>, vector<4x128xf32>
    %c0_1 = arith.constant 0 : index
    %c0_2 = arith.constant 0 : index
    %1 = vector.load %arg3[%c0_1, %c0_2] : memref<128x128xf32, #tpu.memory_space<vmem>>, vector<128x128xf32>
    %cst = arith.constant dense<0.000000e+00> : vector<4x128xf32>
    %2 = tpu.matmul %0, %1, %cst {dimension_numbers = #tpu.dot_dimension_numbers<[1], [0], [0], [1], [0, 0, 1, 1], [], []>} : vector<4x128xf32>, vector<128x128xf32>, vector<4x128xf32> -> vector<4x128xf32>
    %cst_3 = arith.constant 3.125000e-02 : f32
    %3 = vector.broadcast %cst_3 : f32 to vector<4x128xf32>
    %4 = arith.mulf %2, %3 : vector<4x128xf32>
    %5 = arith.subf %0, %4 : vector<4x128xf32>
    %6 = arith.mulf %5, %5 : vector<4x128xf32>
    %cst_4 = arith.constant dense<0.000000e+00> : vector<4x128xf32>
    %7 = tpu.matmul %6, %1, %cst_4 {dimension_numbers = #tpu.dot_dimension_numbers<[1], [0], [0], [1], [0, 0, 1, 1], [], []>} : vector<4x128xf32>, vector<128x128xf32>, vector<4x128xf32> -> vector<4x128xf32>
    %cst_5 = arith.constant 3.125000e-02 : f32
    %8 = vector.broadcast %cst_5 : f32 to vector<4x128xf32>
    %9 = arith.mulf %7, %8 : vector<4x128xf32>
    %cst_6 = arith.constant 9.99999974E-6 : f32
    %10 = vector.broadcast %cst_6 : f32 to vector<4x128xf32>
    %11 = arith.addf %9, %10 : vector<4x128xf32>
    %12 = math.rsqrt %11 : vector<4x128xf32>
    %c0_7 = arith.constant 0 : index
    %c0_8 = arith.constant 0 : index
    %13 = vector.load %arg2[%c0_7, %c0_8] : memref<2x128xf32, #tpu.memory_space<vmem>>, vector<1x128xf32>
    %c1 = arith.constant 1 : index
    %c0_9 = arith.constant 0 : index
    %14 = vector.load %arg2[%c1, %c0_9] : memref<2x128xf32, #tpu.memory_space<vmem>>, vector<1x128xf32>
    %15 = arith.mulf %5, %12 : vector<4x128xf32>
    %16 = vector.broadcast %13 : vector<1x128xf32> to vector<4x128xf32>
    %17 = arith.mulf %15, %16 : vector<4x128xf32>
    %18 = vector.broadcast %14 : vector<1x128xf32> to vector<4x128xf32>
    %19 = arith.addf %17, %18 : vector<4x128xf32>
    %c0_10 = arith.constant 0 : index
    %c0_11 = arith.constant 0 : index
    %20 = vector.load %arg4[%c0_10, %c0_11] : memref<4x128xf32, #tpu.memory_space<vmem>>, vector<4x128xf32>
    tpu.vector_store %arg4[%c0_10, %c0_11], %19 {strides = array<i32>} : memref<4x128xf32, #tpu.memory_space<vmem>>, vector<4x128xf32>,
    return
  }
  func.func @transform_0(%arg0: i32) -> (i32, i32) {
    %c0_i32 = arith.constant 0 : i32
    %c0_i32_0 = arith.constant 0 : i32
    return %arg0, %c0_i32 : i32, i32
  }
  func.func @transform_1(%arg0: i32) -> (i32, i32) {
    %c0_i32 = arith.constant 0 : i32
    %c0_i32_0 = arith.constant 0 : i32
    %c0_i32_1 = arith.constant 0 : i32
    return %c0_i32, %c0_i32_0 : i32, i32
  }
  func.func @transform_2(%arg0: i32) -> (i32, i32) {
    %c0_i32 = arith.constant 0 : i32
    %c0_i32_0 = arith.constant 0 : i32
    %c0_i32_1 = arith.constant 0 : i32
    return %c0_i32, %c0_i32_0 : i32, i32
  }
  func.func @transform_3(%arg0: i32) -> (i32, i32) {
    %c0_i32 = arith.constant 0 : i32
    %c0_i32_0 = arith.constant 0 : i32
    return %arg0, %c0_i32 : i32, i32
  }
}

</mosaic_0001>

<bundles_post_ra>
// kernel: tpu_custom_call.1
= control target key start
LH: loop header
LB: loop body
LE: loop exit
PB: predicated region body
PF: predicated region fallthrough
CT: control target
= control target key end

     0   :  { %8 = vsyncpa [#allocation3], 0  ;;  %s547_s0 = inlined_call_operand.hbm [shape: f32[4,128], index: 0, kind: input, shape index: {}]   ;;  %s548_s1 = inlined_call_operand.vmem [shape: f32[2,128], index: 1, kind: input, shape index: {}]   ;;  %s549_s2 = inlined_call_operand.hbm [shape: f32[128,128], index: 2, kind: input, shape index: {}]   ;;  %s550_s3 = inlined_call_operand.hbm [shape: f32[4,128], index: 3, kind: output, shape index: {}]  }
   0x1   :  { %9 = vsyncpa [#allocation6], 0 }
   0x2   :  { %10 = vsyncpa [#allocation4], 0  ;;  %s470_s12 = smov [#allocation2]   ;;  %s471_s14 = smov [#allocation5]  }
   0x3   :  { %s17_s13 = sshll.u32 %s470_s12, 4  ;;  %s28_s15 = sshll.u32 %s471_s14, 4  ;;  %s18_s13 = int_to_ptr.vmem [resolvable:$true] %s17_s13  ;;  %s498_s15 = int_to_ptr.vmem [resolvable:$true] %s28_s15 }
   0x4   :  { %s398_s18 = scalar_lea.hbm %s547_s0, 64 }
   0x5   :  { %p399_p0 = scmp.ne.s32.totalorder %s547_s0, %s398_s18  ;;  %p402_p1 = scmp.lt.u32.totalorder %s398_s18, %s547_s0 }
   0x7   :  { %p404_p2 = pnand %p402_p1, %p399_p0 }
   0x9   :  { %407 = shalt.err (!%p404_p2)
}
   0xa   :  { %s408_s23 = scalar_lea.vmem %s18_s13, 64  ;;  %p413_p4 = scmp.lt.s32.totalorder %s18_s13, %s18_s13 }
   0xb   :  { %p409_p3 = scmp.ne.s32.totalorder %s18_s13, %s408_s23  ;;  %p414_p5 = scmp.lt.s32.totalorder %s408_s23, %s408_s23 }
   0xd   :  { %p415_p6 = por %p414_p5, %p413_p4 }
   0xf   :  { %p416_p7 = pnand %p415_p6, %p409_p3 }
  0x11   :  { %419 = shalt.err (!%p416_p7)
}
  0x12   :  { %20 = dma.hbm_to_vmem [thread:$0]  %s547_s0, 64, %s18_s13, [#allocation3]  }
  0x13   :  { %s420_s28 = scalar_lea.hbm %s549_s2, 2048 }
  0x14   :  { %p421_p8 = scmp.ne.s32.totalorder %s549_s2, %s420_s28  ;;  %p424_p9 = scmp.lt.u32.totalorder %s420_s28, %s549_s2 }
  0x16   :  { %p426_p10 = pnand %p424_p9, %p421_p8 }
  0x18   :  { %429 = shalt.err (!%p426_p10)
}
  0x19   :  { %s430_s6 = scalar_lea.vmem %s498_s15, 2048  ;;  %p435_p12 = scmp.lt.s32.totalorder %s498_s15, %s498_s15 }
  0x1a   :  { %p431_p11 = scmp.ne.s32.totalorder %s498_s15, %s430_s6  ;;  %p436_p13 = scmp.lt.s32.totalorder %s430_s6, %s430_s6 }
  0x1c   :  { %p437_p0 = por %p436_p13, %p435_p12 }
  0x1e   :  { %p438_p1 = pnand %p437_p0, %p431_p11 }
  0x20   :  { %441 = shalt.err (!%p438_p1)
}
  0x21   :  { %s472_s0 = smov 128   ;;  %s473_s7 = smov 8  }
  0x22   :  { %34 = dma.hbm_to_vmem [thread:$0]  %s549_s2, 2048, %s498_s15, [#allocation6], %s472_s0, %s472_s0, %s473_s7  }
  0x23   :  { %464 = dma.done.wait [#allocation3], 64  }
  0x24   :  { %465 = vsyncadd [#allocation3], 4294967232 }
  0x25   :  { %466 = dma.done.wait [#allocation6], 2048  }
  0x26   :  { %467 = vsyncadd [#allocation6], 4294965248  ;;  %v474_v0 = vmov 0.0|0.0   ;;  %vm475_vm0 = vmmov 0   ;;  %v476_v1 = vmov 0.0   ;;  %v42_v2 = vld [vmem:[#allocation5] sm:$0xff] }
  0x27   :  { %340 = vmatprep.subr.bf16.mxu0 %v474_v0  ;;  %302 = vmatprep.mubr.msk.f32.mxu0 %vm475_vm0, %v476_v1  ;;  %v43_v3 = vld [vmem:[#allocation5 + $0x8] sm:$0xff]  ;;  %v44_v4 = vld [vmem:[#allocation5 + $0x10] sm:$0xff]  ;;  %v45_v6 = vld [vmem:[#allocation5 + $0x18] sm:$0xff]  ;;  %s477_s13 = smov [#allocation7]  }
  0x28   :  { %364 = vmatprep.subr.bf16.mxu1 %v474_v0  ;;  %337 = vmatprep.mubr.msk.f32.mxu1 %vm475_vm0, %v476_v1  ;;  %v341_v5 = vpack.c.bf16 %v43_v3, %v42_v2  ;;  %v344_v7 = vpack.c.bf16 %v45_v6, %v44_v4  ;;  %v46_v8 = vld [vmem:[#allocation5 + $0x20] sm:$0xff]  ;;  %v47_v9 = vld [vmem:[#allocation5 + $0x28] sm:$0xff]  ;;  %v48_v11 = vld [vmem:[#allocation5 + $0x30] sm:$0xff]  ;;  %s224_s14 = sshll.u32 %s477_s13, 4  ;;  %s225_s14 = int_to_ptr.vmem [resolvable:$true] %s224_s14 }
  0x29   :  { %v347_v10 = vpack.c.bf16 %v47_v9, %v46_v8  ;;  %v49_v12 = vld [vmem:[#allocation5 + $0x38] sm:$0xff]  ;;  %v50_v14 = vld [vmem:[#allocation5 + $0x40] sm:$0xff]  ;;  %v51_v15 = vld [vmem:[#allocation5 + $0x48] sm:$0xff]  ;;  %s442_s15 = scalar_lea.vmem %s225_s14, 64  ;;  %p447_p3 = scmp.lt.s32.totalorder %s225_s14, %s225_s14 }
  0x2a   :  { %342 = vmatpush3.bf16.msra.mxu0 %v341_v5  ;;  %366 = vmatpush3.bf16.msra.mxu1 %v341_v5  ;;  %v350_v13 = vpack.c.bf16 %v49_v12, %v48_v11  ;;  %v353_v16 = vpack.c.bf16 %v51_v15, %v50_v14  ;;  %v52_v17 = vld [vmem:[#allocation5 + $0x50] sm:$0xff]  ;;  %v53_v18 = vld [vmem:[#allocation5 + $0x58] sm:$0xff]  ;;  %v54_v20 = vld [vmem:[#allocation5 + $0x60] sm:$0xff]  ;;  %p443_p2 = scmp.ne.s32.totalorder %s225_s14, %s442_s15  ;;  %p448_p4 = scmp.lt.s32.totalorder %s442_s15, %s442_s15 }
  0x2b   :  { %343 = vmatprep.subr.bf16.mxu0 %v474_v0  ;;  %367 = vmatprep.subr.bf16.mxu1 %v474_v0  ;;  %v356_v19 = vpack.c.bf16 %v53_v18, %v52_v17  ;;  %v55_v21 = vld [vmem:[#allocation5 + $0x68] sm:$0xff]  ;;  %v56_v23 = vld [vmem:[#allocation5 + $0x70] sm:$0xff]  ;;  %v57_v24 = vld [vmem:[#allocation5 + $0x78] sm:$0xff] }
  0x2c   :  { %v359_v22 = vpack.c.bf16 %v55_v21, %v54_v20  ;;  %v362_v25 = vpack.c.bf16 %v57_v24, %v56_v23  ;;  %v41_v26 = vld [vmem:[#allocation2] sm:$0xf]  ;;  %p449_p5 = por %p448_p4, %p447_p3 }
  0x2d   :  { %v234_v37 = vld [vmem:[%s548_s1] ss:$0 sm:$0xff]  ;;  %v235_v39 = vld [vmem:[%s548_s1 + $0x1] ss:$0 sm:$0xff] }
  0x2e   :  { %345 = vmatpush3.bf16.msra.mxu0 %v344_v7  ;;  %369 = vmatpush3.bf16.msra.mxu1 %v344_v7  ;;  %p450_p6 = pnand %p449_p5, %p443_p2 }
  0x2f   :  { %346 = vmatprep.subr.bf16.mxu0 %v474_v0  ;;  %370 = vmatprep.subr.bf16.mxu1 %v474_v0 }
  0x32   :  { %348 = vmatpush3.bf16.msra.mxu0 %v347_v10  ;;  %372 = vmatpush3.bf16.msra.mxu1 %v347_v10 }
  0x33   :  { %349 = vmatprep.subr.bf16.mxu0 %v474_v0  ;;  %373 = vmatprep.subr.bf16.mxu1 %v474_v0 }
  0x36   :  { %351 = vmatpush3.bf16.msra.mxu0 %v350_v13  ;;  %375 = vmatpush3.bf16.msra.mxu1 %v350_v13 }
  0x37   :  { %352 = vmatprep.subr.bf16.mxu0 %v474_v0  ;;  %376 = vmatprep.subr.bf16.mxu1 %v474_v0 }
  0x3a   :  { %354 = vmatpush3.bf16.msra.mxu0 %v353_v16  ;;  %378 = vmatpush3.bf16.msra.mxu1 %v353_v16 }
  0x3b   :  { %355 = vmatprep.subr.bf16.mxu0 %v474_v0  ;;  %379 = vmatprep.subr.bf16.mxu1 %v474_v0 }
  0x3e   :  { %357 = vmatpush3.bf16.msra.mxu0 %v356_v19  ;;  %381 = vmatpush3.bf16.msra.mxu1 %v356_v19 }
  0x3f   :  { %358 = vmatprep.subr.bf16.mxu0 %v474_v0  ;;  %382 = vmatprep.subr.bf16.mxu1 %v474_v0 }
  0x42   :  { %360 = vmatpush3.bf16.msra.mxu0 %v359_v22  ;;  %384 = vmatpush3.bf16.msra.mxu1 %v359_v22 }
  0x43   :  { %361 = vmatprep.subr.bf16.mxu0 %v474_v0  ;;  %385 = vmatprep.subr.bf16.mxu1 %v474_v0 }
  0x46   :  { %363 = vmatpush3.bf16.msra.mxu0 %v362_v25  ;;  %387 = vmatpush3.bf16.msra.mxu1 %v362_v25 }
  0x49   :  { %303 = vmatmul.mubr.f32.vlgmr.msra.gmra.mrb[0].mxu0 %v41_v26 }
 0x11c   :  { %v124_v27 = vpop.f32.mrb[0].mxu0 }
 0x11d   :  { %v128_v28 = vmul.f32 0.03125, %v124_v27  ;;  %v304_v29 = vpop.f32.mrb[1].mxu0 }
 0x11f   :  { %v129_v30 = vsub.f32 %v41_v26, %v128_v28 }
 0x121   :  { %v130_v31 = vmul.f32 %v129_v30, %v129_v30 }
 0x123   :  { %338 = vmatmul.mubr.f32.vlgmr.msra.gmra.mrb[0].mxu1 %v130_v31 }
 0x1f6   :  { %v197_v32 = vpop.f32.mrb[0].mxu1 }
 0x1f7   :  { %v201_v33 = vmul.f32 0.03125, %v197_v32  ;;  %v339_v34 = vpop.f32.mrb[1].mxu1 }
 0x1f9   :  { %v202_v35 = vadd.f32 1e-05, %v201_v33 }
 0x1fb   :  { %396 = vrsqrt.f32 %v202_v35 }
 0x205   :  { %v397_v36 = vpop.eup %396 }
 0x206   :  { %v206_v38 = vmul.f32 %v397_v36, %v129_v30 }
 0x208   :  { %v211_v40 = vmul.f32 %v234_v37, %v206_v38 }
 0x20a   :  { %v216_v41 = vadd.f32 %v235_v39, %v211_v40 }
 0x20c   :  { %217 = vst [vmem:[#allocation7] sm:$0xf] %v216_v41 }
 0x20d   :  { %453 = shalt.err (!%p450_p6)
}
 0x20e   :  { %s454_s18 = scalar_lea.hbm %s550_s3, 64 }
 0x20f   :  { %p455_p7 = scmp.ne.s32.totalorder %s550_s3, %s454_s18  ;;  %p458_p8 = scmp.lt.u32.totalorder %s454_s18, %s550_s3 }
 0x211   :  { %p460_p9 = pnand %p458_p8, %p455_p7 }
 0x213   :  { %463 = shalt.err (!%p460_p9)
}
 0x214   :  { %227 = dma.vmem_to_hbm [thread:$0]  %s225_s14, 64, %s550_s3, [#allocation4]  }
 0x215   :  { %468 = dma.done.wait [#allocation4], 64  }
 0x216   :  { %469 = vsyncadd [#allocation4], 4294967232 }
 0x217   :  { %231 = vsyncpa [#allocation3], 1 }
 0x218   :  { %232 = vsyncpa [#allocation6], 1 }
 0x219   :  { %233 = vsyncpa [#allocation4], 1 }

</bundles_post_ra>
